<compile_context>
chip_gen: v6e
topology: v6e:2x2x1
jax: 0.10.0
libtpu: 0.0.40
codegen_flags: <defaults>
</compile_context>

<pallas_src>
import functools

import jax
import jax.numpy as jnp
from jax.experimental import pallas as pl
from jax.experimental.pallas import tpu as pltpu


def _fm_kernel(w0_ref, x_ref, wa_ref, va_ref, o_ref, *, latent_dim):
    k = latent_dim
    # x tile: (tb, Fp).  Upcast so VPU/MXU math is f32 even for bf16 inputs
    # (no-op for f32 inputs).
    x = x_ref[...].astype(jnp.float32)

    # Two lane-dense MXU pushes against the fused weight blocks:
    #   wa = [w2 | w1 | 0],  va = [0 | v | 0]  with  v = 0.5*sum(w2**2, axis=1)
    #   d[:, :k] = x @ w2
    #   d[:, k]  = x @ w1 - (x**2) @ v
    d = jnp.dot(x, wa_ref[...], preferred_element_type=jnp.float32)
    d = d - jnp.dot(x * x, va_ref[...], preferred_element_type=jnp.float32)

    # Put the batch on the lane axis: the latent-dim reduction becomes a
    # sublane reduction and the store below is a full-width unmasked slab.
    dt = d.T                                               # (ncol, tb)
    xv = dt[:k, :]                                         # (k, tb) = (x@w2)^T
    second = 0.5 * jnp.sum(xv * xv, axis=0, keepdims=True)  # (1, tb)
    lin = dt[k:k + 1, :]                                   # (1, tb)

    # w0 added once per tile (scalar from SMEM), lane-dense (1, tb) store.
    o_ref[...] = (w0_ref[0] + lin + second).astype(o_ref.dtype)


def fm_forward(inputs, w0, w1, w2, *, tb=None,
               vmem_budget_bytes=8 * 1024 * 1024):
    """FM forward.  inputs: (B, fea_num); w0: (1,); w1: (fea_num, 1);
    w2: (fea_num, latent_dim).  Returns float32 (B, 1)."""
    B, F = inputs.shape
    Fw, k = w2.shape
    assert Fw == F and w1.shape == (F, 1) and w0.shape == (1,)

    w0 = w0.astype(jnp.float32)
    w1 = w1.astype(jnp.float32)
    w2 = w2.astype(jnp.float32)

    # ---- host-side weight prep (one-time) --------------------------------
    v = 0.5 * jnp.sum(w2 * w2, axis=1)          # (F,)  folded w2**2 column

    Fp = ((F + 127) // 128) * 128               # lane-dense feature axis
    ncol = ((k + 1 + 7) // 8) * 8               # k latent cols + 1 linear col

    wa = jnp.zeros((Fp, ncol), jnp.float32)
    wa = wa.at[:F, :k].set(w2).at[:F, k].set(w1[:, 0])
    va = jnp.zeros((Fp, ncol), jnp.float32)
    va = va.at[:F, k].set(v)

    # ---- batch tile: as large as a conservative VMEM budget allows -------
    if tb is None:
        bytes_per_row = 4 * Fp
        # ~2x double-buffered x tile + x*x temp + slack; conservative enough
        # for v7x (64 MiB physical / 32 MiB scoped) and v5e's 16 MiB default.
        max_rows = max(128, vmem_budget_bytes // (4 * bytes_per_row))
        tb = min(1024, max_rows)
        tb = max(128, (tb // 128) * 128)
        # Keep >= 2 grid steps when the batch allows it so v7x's two
        # TensorCores both get work through the "parallel" grid axis.
        bp_est = ((B + 127) // 128) * 128
        while tb > 128 and (bp_est + tb - 1) // tb < 2:
            tb //= 2
    tb = max(128, (int(tb) // 128) * 128)

    Bp = ((B + tb - 1) // tb) * tb
    pad_b, pad_f = Bp - B, Fp - F
    if pad_b or pad_f:
        inputs = jnp.pad(inputs, ((0, pad_b), (0, pad_f)))

    grid = (Bp // tb,)
    kernel = functools.partial(_fm_kernel, latent_dim=k)

    out_row = pl.pallas_call(
        kernel,
        out_shape=jax.ShapeDtypeStruct((1, Bp), jnp.float32),
        grid=grid,
        in_specs=[
            # w0: tiny scalar, untiled, in SMEM
            pl.BlockSpec(memory_space=pltpu.MemorySpace.SMEM),
            # inputs: large batch tiles, streamed from HBM
            pl.BlockSpec((tb, Fp), lambda i: (i, 0)),
            # fused weight blocks: full arrays, resident across grid steps
            pl.BlockSpec((Fp, ncol), lambda i: (0, 0)),
            pl.BlockSpec((Fp, ncol), lambda i: (0, 0)),
        ],
        # lane-dense output: one unmasked (1, tb) slab per grid step
        out_specs=pl.BlockSpec((1, tb), lambda i: (0, i)),
        compiler_params=pltpu.CompilerParams(
            dimension_semantics=("parallel",)),
    )(w0, inputs, wa, va)

    return out_row[0, :B].reshape(B, 1)


def fm_reference(inputs, w0, w1, w2):
    hi = jax.lax.Precision.HIGHEST
    first = w0 + jnp.dot(inputs, w1, precision=hi)
    second = 0.5 * jnp.sum(
        jnp.dot(inputs, w2, precision=hi) ** 2
        - jnp.dot(inputs ** 2, w2 ** 2, precision=hi),
        axis=1, keepdims=True)
    return first + second


if __name__ == "__main__":
    # Small shapes consistent with the module: fea_num (concatenated
    # embedding + dense features) = 128, latent_dim = 8, batch = 256.
    B, fea_num, latent_dim = 256, 128, 8

    key = jax.random.PRNGKey(0)
    k_x, k_w1, k_w2, k_x2, k_w12, k_w22 = jax.random.split(key, 6)

    inputs = jax.random.normal(k_x, (B, fea_num), dtype=jnp.float32)
    # Mirror nn.Parameter inits: w0 = zeros([1]); w1, w2 ~ U[0, 1) (torch.rand)
    w0 = jnp.zeros((1,), dtype=jnp.float32)
    w1 = jax.random.uniform(k_w1, (fea_num, 1), dtype=jnp.float32)
    w2 = jax.random.uniform(k_w2, (fea_num, latent_dim), dtype=jnp.float32)

    out = jax.block_until_ready(fm_forward(inputs, w0, w1, w2))
    ref = fm_reference(inputs, w0, w1, w2)
    assert out.shape == (B, 1)
    err = jnp.max(jnp.abs(out - ref))
    assert jnp.allclose(out, ref, rtol=1e-3, atol=1e-2), f"max abs err = {err}"

    # Ragged / unaligned shapes exercise the batch- and feature-padding path.
    B2, F2 = 50, 40
    x2 = jax.random.normal(k_x2, (B2, F2), dtype=jnp.float32)
    w1_2 = jax.random.uniform(k_w12, (F2, 1), dtype=jnp.float32)
    w2_2 = jax.random.uniform(k_w22, (F2, latent_dim), dtype=jnp.float32)
    out2 = jax.block_until_ready(fm_forward(x2, w0, w1_2, w2_2))
    ref2 = fm_reference(x2, w0, w1_2, w2_2)
    assert out2.shape == (B2, 1)
    err2 = jnp.max(jnp.abs(out2 - ref2))
    assert jnp.allclose(out2, ref2, rtol=1e-3, atol=1e-2), f"max abs err = {err2}"

    print("KERNEL_OK")
</pallas_src>

<mosaic_0001>
module attributes {stable_mosaic.version = 11 : i64} {
  func.func @_fm_kernel(%arg0: i32, %arg1: memref<1xf32, #tpu.memory_space<smem>>, %arg2: memref<128x128xf32, #tpu.memory_space<vmem>>, %arg3: memref<128x16xf32, #tpu.memory_space<vmem>>, %arg4: memref<128x16xf32, #tpu.memory_space<vmem>>, %arg5: memref<1x128xf32, #tpu.memory_space<vmem>>) attributes {dimension_semantics = [#tpu.dimension_semantics<parallel>], iteration_bounds = array<i64: 2>, scalar_prefetch = 0 : i64, scratch_operands = 0 : i64, tpu.core_type = #tpu.core_type<tc>, window_params = [{transform_indices = @transform_0, window_bounds = array<i64: 1>}, {transform_indices = @transform_1, window_bounds = array<i64: 128, 128>}, {pipeline_mode = #tpu.pipeline_mode<synchronous>, transform_indices = @transform_2, window_bounds = array<i64: 128, 16>}, {pipeline_mode = #tpu.pipeline_mode<synchronous>, transform_indices = @transform_3, window_bounds = array<i64: 128, 16>}, {transform_indices = @transform_4, window_bounds = array<i64: 1, 128>}]} {
    %c0 = arith.constant 0 : index
    %c0_0 = arith.constant 0 : index
    %0 = vector.load %arg2[%c0, %c0_0] : memref<128x128xf32, #tpu.memory_space<vmem>>, vector<128x128xf32>
    %c0_1 = arith.constant 0 : index
    %c0_2 = arith.constant 0 : index
    %1 = vector.load %arg3[%c0_1, %c0_2] : memref<128x16xf32, #tpu.memory_space<vmem>>, vector<128x16xf32>
    %cst = arith.constant dense<0.000000e+00> : vector<128x16xf32>
    %2 = tpu.matmul %0, %1, %cst {dimension_numbers = #tpu.dot_dimension_numbers<[1], [0], [0], [1], [0, 0, 1, 1], [], []>} : vector<128x128xf32>, vector<128x16xf32>, vector<128x16xf32> -> vector<128x16xf32>
    %3 = arith.mulf %0, %0 : vector<128x128xf32>
    %c0_3 = arith.constant 0 : index
    %c0_4 = arith.constant 0 : index
    %4 = vector.load %arg4[%c0_3, %c0_4] : memref<128x16xf32, #tpu.memory_space<vmem>>, vector<128x16xf32>
    %cst_5 = arith.constant dense<0.000000e+00> : vector<128x16xf32>
    %5 = tpu.matmul %3, %4, %cst_5 {dimension_numbers = #tpu.dot_dimension_numbers<[1], [0], [0], [1], [0, 0, 1, 1], [], []>} : vector<128x128xf32>, vector<128x16xf32>, vector<128x16xf32> -> vector<128x16xf32>
    %6 = arith.subf %2, %5 : vector<128x16xf32>
    %7 = tpu.transpose %6, [1, 0] : vector<128x16xf32> -> vector<16x128xf32>
    %8 = vector.extract_strided_slice %7 {offsets = [0, 0], sizes = [8, 128], strides = [1, 1]} : vector<16x128xf32> to vector<8x128xf32>
    %9 = arith.mulf %8, %8 : vector<8x128xf32>
    %cst_6 = arith.constant dense<0.000000e+00> : vector<128xf32>
    %10 = vector.multi_reduction <add>, %9, %cst_6 [0] : vector<8x128xf32> to vector<128xf32>
    %11 = vector.shape_cast %10 : vector<128xf32> to vector<1x128xf32>
    %cst_7 = arith.constant 5.000000e-01 : f32
    %12 = vector.broadcast %cst_7 : f32 to vector<1x128xf32>
    %13 = arith.mulf %12, %11 : vector<1x128xf32>
    %14 = vector.extract_strided_slice %7 {offsets = [8, 0], sizes = [1, 128], strides = [1, 1]} : vector<16x128xf32> to vector<1x128xf32>
    %c0_8 = arith.constant 0 : index
    %15 = memref.load %arg1[%c0_8] : memref<1xf32, #tpu.memory_space<smem>>
    %16 = vector.broadcast %15 : f32 to vector<1x128xf32>
    %17 = arith.addf %16, %14 : vector<1x128xf32>
    %18 = arith.addf %17, %13 : vector<1x128xf32>
    %c0_9 = arith.constant 0 : index
    %c0_10 = arith.constant 0 : index
    %19 = vector.load %arg5[%c0_9, %c0_10] : memref<1x128xf32, #tpu.memory_space<vmem>>, vector<1x128xf32>
    tpu.vector_store %arg5[%c0_9, %c0_10], %18 {strides = array<i32>} : memref<1x128xf32, #tpu.memory_space<vmem>>, vector<1x128xf32>,
    return
  }
  func.func @transform_0(%arg0: i32) -> i32 {
    %c0_i32 = arith.constant 0 : i32
    %c0_i32_0 = arith.constant 0 : i32
    return %c0_i32 : i32
  }
  func.func @transform_1(%arg0: i32) -> (i32, i32) {
    %c0_i32 = arith.constant 0 : i32
    %c0_i32_0 = arith.constant 0 : i32
    return %arg0, %c0_i32 : i32, i32
  }
  func.func @transform_2(%arg0: i32) -> (i32, i32) {
    %c0_i32 = arith.constant 0 : i32
    %c0_i32_0 = arith.constant 0 : i32
    %c0_i32_1 = arith.constant 0 : i32
    return %c0_i32, %c0_i32_0 : i32, i32
  }
  func.func @transform_3(%arg0: i32) -> (i32, i32) {
    %c0_i32 = arith.constant 0 : i32
    %c0_i32_0 = arith.constant 0 : i32
    %c0_i32_1 = arith.constant 0 : i32
    return %c0_i32, %c0_i32_0 : i32, i32
  }
  func.func @transform_4(%arg0: i32) -> (i32, i32) {
    %c0_i32 = arith.constant 0 : i32
    %c0_i32_0 = arith.constant 0 : i32
    return %c0_i32, %arg0 : i32, i32
  }
}

</mosaic_0001>

<bundles_post_ra>
// kernel: tpu_custom_call.1
= control target key start
LH: loop header
LB: loop body
LE: loop exit
PB: predicated region body
PF: predicated region fallthrough
CT: control target
= control target key end

     0   :  { %s1200_s0 = inlined_call_operand.<no memory space> [shape: f32[1], index: 0, kind: input, shape index: {}]   ;;  %s1201_s1 = inlined_call_operand.vmem [shape: f32[256,128], index: 1, kind: input, shape index: {}]   ;;  %s1202_s2 = inlined_call_operand.vmem [shape: f32[128,16], index: 2, kind: input, shape index: {}]   ;;  %s1203_s3 = inlined_call_operand.vmem [shape: f32[128,16], index: 3, kind: input, shape index: {}]   ;;  %s1204_s4 = inlined_call_operand.hbm [shape: f32[1,256], index: 4, kind: output, shape index: {}]  }
   0x1   :  { %9 = sst [smem:[#allocation2]] %s1200_s0 }
   0x2   :  { %10 = vsyncpa [#allocation4], 0 }
   0x3   :  { %12 = vsyncpa [#allocation4 + $0x1], 0  ;;  %s996_s17 = smov 0   ;;  %s998_s18 = smov 0  }
   0x4   :  { %s1000_s19 = smov 0   ;;  %s1002_s20 = smov 0  }
   0x5 LB: > { %s680_s0 = sadd.s32 4294967295, %s965_s20   ;;  %s681_s21 = sadd.s32 4294967294, %s965_s20   ;;  %s965_s20 = sphi %s1002_s20, %s1210_s20   ;;  %s961_s19 = sphi %s1000_s19, %s1209_s19   ;;  %s957_s18 = sphi %s998_s18, %s1208_s18   ;;  %s953_s17 = sphi %s996_s17, %s1207_s17  }
   0x6   : > { %s1019_s22 = sadd.s32 1, %s965_s20   ;;  %s114_s23 = sadd.s32 1, %s961_s19 }
   0x7   : > { %s111_s24 = ssub.s32 %s965_s20, %s1019_s22  ;;  %p124_p0 = scmp.ne.s32.totalorder %s961_s19, %s957_s18 }
   0x8   : > { %p112_p1 = scmp.eq.s32.totalorder %s111_s24, 0  ;;  %p125_p2 = scmp.eq.s32.totalorder %s680_s0, 1 }
   0x9   : > { %p130_p3 = scmp.ne.s32.totalorder %s957_s18, %s953_s17  ;;  %p131_p4 = scmp.eq.s32.totalorder %s681_s21, 1 }
   0xa   : > { %s1031_s25 = scalar_select %p112_p1, %s961_s19, %s114_s23  }
   0xb   : > { %p1033_p5 = por %p125_p2, %p124_p0  ;;  %p1037_p6 = por %p131_p4, %p130_p3 }
   0xc   : > { %p684_p7 = scmp.ge.s32.totalorder %s965_s20, 1  ;;  %p167_p8 = scmp.lt.s32.totalorder %s965_s20, 3 }
   0xe   : > { %p168_p9 = pnand %p684_p7, %p167_p8 }
   0xf   : > { %s1081_s8 = sshll.u32 (!%p168_p9), %s680_s0, 4  ;;  %s608_s21 = sld [smem:[#allocation2]] (!%p168_p9) }
  0x10   : > { %171 = sbr.rel (%p168_p9) target bundleno = 409 (0x199), region = 36  ;;  %p193_p10 = scmp.lt.s32.totalorder (!%p168_p9), %s1081_s8, 31 }
  0x11   : > { %s190_s23 = sand.u32 (!%p168_p9), 1, %s957_s18   ;;  %s624_s5 = scalar_lea.hbm (!%p168_p9), %s1204_s4, %s1081_s8 }
  0x12   : > { %s191_s24 = scalar_lea.vmem (!%p168_p9), [#allocation3], %s190_s23  ;;  %s967_s9 = smov (!%p168_p9), [#allocation3]  }
  0x13   : > { %s626_s28 = sshll.u32 (!%p168_p9), %s191_s24, 4  ;;  %s909_s10 = sshll.u32 (!%p168_p9), %s967_s9, 4  ;;  %s627_s28 = int_to_ptr.vmem [resolvable:$true] %s626_s28  ;;  %s910_s10 = int_to_ptr.vmem [resolvable:$false] %s909_s10 }
  0x14   : > { %s905_s7 = scalar_lea.vmem (!%p168_p9), %s627_s28, 16  ;;  %s911_s11 = scalar_lea.vmem (!%p168_p9), %s910_s10, 32 }
  0x15   : > { %v229_v0 = vld [vmem:[%s1202_s2 + $0x78] sm:$0xff]  ;;  %v228_v2 = vld [vmem:[%s1202_s2 + $0x70] sm:$0xff]  ;;  %v227_v4 = vld [vmem:[%s1202_s2 + $0x68] sm:$0xff]  ;;  %s194_s6 = scalar_select %p193_p10, %s1081_s8, 31 }
  0x16   : > { %v406_v1 = vld [vmem:[%s1203_s3 + $0x78] sm:$0xff]  ;;  %754 = vmatprep.subr.mxu0 %v229_v0  ;;  %v405_v3 = vld [vmem:[%s1203_s3 + $0x70] sm:$0xff]  ;;  %v404_v5 = vld [vmem:[%s1203_s3 + $0x68] sm:$0xff]  ;;  %p906_p11 = scmp.ne.s32.totalorder %s627_s28, %s905_s7  ;;  %p912_p0 = scmp.lt.s32.totalorder %s627_s28, %s910_s10 }
  0x17   : > { %810 = vmatprep.subr.mxu1 %v406_v1  ;;  %755 = vmatpush3.msra.mxu0 %v229_v0  ;;  %v226_v6 = vld [vmem:[%s1202_s2 + $0x60] sm:$0xff]  ;;  %v225_v8 = vld [vmem:[%s1202_s2 + $0x58] sm:$0xff]  ;;  %v224_v10 = vld [vmem:[%s1202_s2 + $0x50] sm:$0xff]  ;;  %s686_s15 = sshll.u32 %s194_s6, 3  ;;  %s614_s6 = scalar_lea.sflag [#allocation4], %s190_s23 }
  0x18   : > { %811 = vmatpush3.msra.mxu1 %v406_v1  ;;  %756 = vmatprep.subr.mxu0 %v228_v2  ;;  %v403_v7 = vld [vmem:[%s1203_s3 + $0x60] sm:$0xff]  ;;  %v402_v9 = vld [vmem:[%s1203_s3 + $0x58] sm:$0xff]  ;;  %v401_v11 = vld [vmem:[%s1203_s3 + $0x50] sm:$0xff]  ;;  %s1130_s30 = scalar_lea.vmem %s1201_s1, %s686_s15  ;;  %p907_p12 = pnand %p906_p11, %p1033_p5 }
  0x19   : > { %812 = vmatprep.subr.mxu1 %v405_v3  ;;  %757 = vmatpush3.msra.mxu0 %v228_v2  ;;  %v223_v12 = vld [vmem:[%s1202_s2 + $0x48] sm:$0xff]  ;;  %v222_v14 = vld [vmem:[%s1202_s2 + $0x40] sm:$0xff]  ;;  %v221_v16 = vld [vmem:[%s1202_s2 + $0x38] sm:$0xff]  ;;  %p913_p1 = scmp.lt.s32.totalorder %s911_s11, %s905_s7 }
  0x1a   : > { %813 = vmatpush3.msra.mxu1 %v405_v3  ;;  %758 = vmatprep.subr.mxu0 %v227_v4  ;;  %v400_v13 = vld [vmem:[%s1203_s3 + $0x48] sm:$0xff]  ;;  %v399_v15 = vld [vmem:[%s1203_s3 + $0x40] sm:$0xff]  ;;  %v398_v17 = vld [vmem:[%s1203_s3 + $0x38] sm:$0xff]  ;;  %p908_p13 = pneg %p907_p12 }
  0x1b   : > { %814 = vmatprep.subr.mxu1 %v404_v5  ;;  %759 = vmatpush3.msra.mxu0 %v227_v4  ;;  %v220_v18 = vld [vmem:[%s1202_s2 + $0x30] sm:$0xff]  ;;  %v219_v20 = vld [vmem:[%s1202_s2 + $0x28] sm:$0xff]  ;;  %v218_v22 = vld [vmem:[%s1202_s2 + $0x20] sm:$0xff]  ;;  %p914_p2 = por %p913_p1, %p912_p0 }
  0x1c   : > { %815 = vmatpush3.msra.mxu1 %v404_v5  ;;  %760 = vmatprep.subr.mxu0 %v226_v6  ;;  %v397_v19 = vld [vmem:[%s1203_s3 + $0x30] sm:$0xff]  ;;  %v396_v21 = vld [vmem:[%s1203_s3 + $0x28] sm:$0xff]  ;;  %v395_v23 = vld [vmem:[%s1203_s3 + $0x20] sm:$0xff] }
  0x1d   : > { %816 = vmatprep.subr.mxu1 %v403_v7  ;;  %761 = vmatpush3.msra.mxu0 %v226_v6  ;;  %v217_v24 = vld [vmem:[%s1202_s2 + $0x18] sm:$0xff]  ;;  %v216_v26 = vld [vmem:[%s1202_s2 + $0x10] sm:$0xff]  ;;  %v215_v28 = vld [vmem:[%s1202_s2 + $0x8] sm:$0xff]  ;;  %p915_p3 = pnand %p914_p2, %p908_p13 }
  0x1e   : > { %817 = vmatpush3.msra.mxu1 %v403_v7  ;;  %762 = vmatprep.subr.mxu0 %v225_v8  ;;  %v394_v25 = vld [vmem:[%s1203_s3 + $0x18] sm:$0xff]  ;;  %v393_v27 = vld [vmem:[%s1203_s3 + $0x10] sm:$0xff]  ;;  %v392_v29 = vld [vmem:[%s1203_s3 + $0x8] sm:$0xff] }
  0x1f   : > { %818 = vmatprep.subr.mxu1 %v402_v9  ;;  %763 = vmatpush3.msra.mxu0 %v225_v8  ;;  %v198_v30 = vld [vmem:[%s1130_s30] sm:$0xff]  ;;  %v199_v31 = vld [vmem:[%s1130_s30 + $0x8] sm:$0xff]  ;;  %v200_v34 = vld [vmem:[%s1130_s30 + $0x10] sm:$0xff] }
  0x20   : > { %819 = vmatpush3.msra.mxu1 %v402_v9  ;;  %764 = vmatprep.subr.mxu0 %v224_v10  ;;  %v214_v32 = vld [vmem:[%s1202_s2] sm:$0xff]  ;;  %v375_v35 = vmul.f32 %v198_v30, %v198_v30  ;;  %v376_v36 = vmul.f32 %v199_v31, %v199_v31  ;;  %v377_v37 = vmul.f32 %v200_v34, %v200_v34  ;;  %v201_v38 = vld [vmem:[%s1130_s30 + $0x18] sm:$0xff]  ;;  %v203_v42 = vld [vmem:[%s1130_s30 + $0x28] sm:$0xff] }
  0x21   : > { %820 = vmatprep.subr.mxu1 %v401_v11  ;;  %765 = vmatpush3.msra.mxu0 %v224_v10  ;;  %v391_v33 = vld [vmem:[%s1203_s3] sm:$0xff]  ;;  %v378_v40 = vmul.f32 %v201_v38, %v201_v38  ;;  %v204_v43 = vld [vmem:[%s1130_s30 + $0x30] sm:$0xff]  ;;  %v380_v44 = vmul.f32 %v203_v42, %v203_v42  ;;  %v205_v46 = vld [vmem:[%s1130_s30 + $0x38] sm:$0xff] }
  0x22   : > { %821 = vmatpush3.msra.mxu1 %v401_v11  ;;  %766 = vmatprep.subr.mxu0 %v223_v12  ;;  %v202_v39 = vld [vmem:[%s1130_s30 + $0x20] sm:$0xff]  ;;  %v381_v45 = vmul.f32 %v204_v43, %v204_v43  ;;  %v382_v48 = vmul.f32 %v205_v46, %v205_v46  ;;  %v207_v50 = vld [vmem:[%s1130_s30 + $0x48] sm:$0xff]  ;;  %v208_v51 = vld [vmem:[%s1130_s30 + $0x50] sm:$0xff] }
  0x23   : > { %822 = vmatprep.subr.mxu1 %v400_v13  ;;  %767 = vmatpush3.msra.mxu0 %v223_v12  ;;  %v379_v41 = vmul.f32 %v202_v39, %v202_v39  ;;  %v206_v47 = vld [vmem:[%s1130_s30 + $0x40] sm:$0xff]  ;;  %v384_v52 = vmul.f32 %v207_v50, %v207_v50  ;;  %v385_v53 = vmul.f32 %v208_v51, %v208_v51  ;;  %v209_v54 = vld [vmem:[%s1130_s30 + $0x58] sm:$0xff]  ;;  %v211_v58 = vld [vmem:[%s1130_s30 + $0x68] sm:$0xff] }
  0x24   : > { %823 = vmatpush3.msra.mxu1 %v400_v13  ;;  %768 = vmatprep.subr.mxu0 %v222_v14  ;;  %v383_v49 = vmul.f32 %v206_v47, %v206_v47  ;;  %v210_v55 = vld [vmem:[%s1130_s30 + $0x60] sm:$0xff]  ;;  %v386_v56 = vmul.f32 %v209_v54, %v209_v54  ;;  %v212_v59 = vld [vmem:[%s1130_s30 + $0x70] sm:$0xff]  ;;  %v388_v60 = vmul.f32 %v211_v58, %v211_v58  ;;  %v213_v62 = vld [vmem:[%s1130_s30 + $0x78] sm:$0xff] }
  0x25   : > { %824 = vmatprep.subr.mxu1 %v399_v15  ;;  %769 = vmatpush3.msra.mxu0 %v222_v14  ;;  %v387_v57 = vmul.f32 %v210_v55, %v210_v55  ;;  %v389_v61 = vmul.f32 %v212_v59, %v212_v59  ;;  %v390_v63 = vmul.f32 %v213_v62, %v213_v62 }
  0x26   : > { %825 = vmatpush3.msra.mxu1 %v399_v15  ;;  %770 = vmatprep.subr.mxu0 %v221_v16 }
  0x27   : > { %826 = vmatprep.subr.mxu1 %v398_v17  ;;  %771 = vmatpush3.msra.mxu0 %v221_v16 }
  0x28   : > { %827 = vmatpush3.msra.mxu1 %v398_v17  ;;  %772 = vmatprep.subr.mxu0 %v220_v18 }
  0x29   : > { %828 = vmatprep.subr.mxu1 %v397_v19  ;;  %773 = vmatpush3.msra.mxu0 %v220_v18 }
  0x2a   : > { %829 = vmatpush3.msra.mxu1 %v397_v19  ;;  %774 = vmatprep.subr.mxu0 %v219_v20 }
  0x2b   : > { %830 = vmatprep.subr.mxu1 %v396_v21  ;;  %775 = vmatpush3.msra.mxu0 %v219_v20 }
  0x2c   : > { %831 = vmatpush3.msra.mxu1 %v396_v21  ;;  %776 = vmatprep.subr.mxu0 %v218_v22 }
  0x2d   : > { %832 = vmatprep.subr.mxu1 %v395_v23  ;;  %777 = vmatpush3.msra.mxu0 %v218_v22 }
  0x2e   : > { %833 = vmatpush3.msra.mxu1 %v395_v23  ;;  %778 = vmatprep.subr.mxu0 %v217_v24 }
  0x2f   : > { %834 = vmatprep.subr.mxu1 %v394_v25  ;;  %779 = vmatpush3.msra.mxu0 %v217_v24 }
  0x30   : > { %835 = vmatpush3.msra.mxu1 %v394_v25  ;;  %780 = vmatprep.subr.mxu0 %v216_v26 }
  0x31   : > { %836 = vmatprep.subr.mxu1 %v393_v27  ;;  %781 = vmatpush3.msra.mxu0 %v216_v26 }
  0x32   : > { %837 = vmatpush3.msra.mxu1 %v393_v27  ;;  %782 = vmatprep.subr.mxu0 %v215_v28 }
  0x33   : > { %838 = vmatprep.subr.mxu1 %v392_v29  ;;  %783 = vmatpush3.msra.mxu0 %v215_v28 }
  0x34   : > { %839 = vmatpush3.msra.mxu1 %v392_v29  ;;  %784 = vmatprep.subr.mxu0 %v214_v32 }
  0x35   : > { %840 = vmatprep.subr.mxu1 %v391_v33  ;;  %785 = vmatpush3.msra.mxu0 %v214_v32 }
  0x36   : > { %786 = vmatprep.mubr.f32.mxu0 %v198_v30  ;;  %841 = vmatpush3.msra.mxu1 %v391_v33 }
  0x37   : > { %842 = vmatprep.mubr.f32.mxu1 %v375_v35  ;;  %787 = vmatmul.mubr.f32.vlgmr.msra.gmra.mxu0 %v199_v31 }
  0x38   : > { %843 = vmatmul.mubr.f32.vlgmr.msra.gmra.mxu1 %v376_v36  ;;  %789 = vmatprep.mubr.f32.mxu0 %v200_v34 }
  0x39   : > { %845 = vmatprep.mubr.f32.mxu1 %v377_v37 }
  0x3b   : > { %790 = vmatmul.mubr.f32.gmra.mxu0 %v201_v38 }
  0x3c   : > { %846 = vmatmul.mubr.f32.gmra.mxu1 %v378_v40  ;;  %792 = vmatprep.mubr.f32.mxu0 %v202_v39 }
  0x3d   : > { %848 = vmatprep.mubr.f32.mxu1 %v379_v41 }
  0x3f   : > { %793 = vmatmul.mubr.f32.gmra.mxu0 %v203_v42 }
  0x40   : > { %849 = vmatmul.mubr.f32.gmra.mxu1 %v380_v44  ;;  %795 = vmatprep.mubr.f32.mxu0 %v204_v43 }
  0x41   : > { %851 = vmatprep.mubr.f32.mxu1 %v381_v45 }
  0x43   : > { %796 = vmatmul.mubr.f32.gmra.mxu0 %v205_v46 }
  0x44   : > { %852 = vmatmul.mubr.f32.gmra.mxu1 %v382_v48  ;;  %798 = vmatprep.mubr.f32.mxu0 %v206_v47 }
  0x45   : > { %854 = vmatprep.mubr.f32.mxu1 %v383_v49 }
  0x47   : > { %799 = vmatmul.mubr.f32.gmra.mxu0 %v207_v50 }
  0x48   : > { %855 = vmatmul.mubr.f32.gmra.mxu1 %v384_v52  ;;  %801 = vmatprep.mubr.f32.mxu0 %v208_v51 }
  0x49   : > { %857 = vmatprep.mubr.f32.mxu1 %v385_v53 }
  0x4b   : > { %802 = vmatmul.mubr.f32.gmra.mxu0 %v209_v54 }
  0x4c   : > { %858 = vmatmul.mubr.f32.gmra.mxu1 %v386_v56  ;;  %804 = vmatprep.mubr.f32.mxu0 %v210_v55  ;;  %v609_v55 = vstv %s608_s21 }
  0x4d   : > { %860 = vmatprep.mubr.f32.mxu1 %v387_v57 }
  0x4f   : > { %805 = vmatmul.mubr.f32.gmra.mxu0 %v211_v58 }
  0x50   : > { %861 = vmatmul.mubr.f32.gmra.mxu1 %v388_v60  ;;  %807 = vmatprep.mubr.f32.mxu0 %v212_v59 }
  0x51   : > { %863 = vmatprep.mubr.f32.mxu1 %v389_v61 }
  0x53   : > { %808 = vmatmul.mubr.f32.gmra.mxu0 %v213_v62 }
  0x54   : > { %864 = vmatmul.mubr.f32.gmra.mxu1 %v390_v63 }
  0xf7   : > { %v788_v0 = vpop.f32.mrf.mxu0 }
  0xf8   : > { %v844_v1 = vpop.f32.mrf.mxu1 }
  0xf9   : > { %v296_v2 = vpop.f32.mrf.mxu0  ;;  %v553_v7 = vsub.f32 %v788_v0, %v844_v1 }
  0xfa   : > { %v473_v3 = vpop.f32.mrf.mxu1 }
  0xfb   : > { %v552_v4 = vsub.f32 %v296_v2, %v473_v3  ;;  %v791_v5 = vpop.f32.mrf.mxu0 }
  0xfc   : > { %v847_v6 = vpop.f32.mrf.mxu1 }
  0xfd   : > { %568 = vxpose.xlu0.b32.start [1/16] (narrow) %v552_v4, 16  ;;  %v306_v8 = vpop.f32.mrf.mxu0  ;;  %v555_v13 = vsub.f32 %v791_v5, %v847_v6 }
  0xfe   : > { %v483_v9 = vpop.f32.mrf.mxu1 }
  0xff   : > { %v554_v10 = vsub.f32 %v306_v8, %v483_v9  ;;  %v794_v11 = vpop.f32.mrf.mxu0 }
 0x100   : > { %v850_v12 = vpop.f32.mrf.mxu1 }
 0x101   : > { %569 = vxpose.xlu0.b32.cont [2/16] (narrow) %v553_v7, 16  ;;  %v316_v14 = vpop.f32.mrf.mxu0  ;;  %v557_v19 = vsub.f32 %v794_v11, %v850_v12 }
 0x102   : > { %v493_v15 = vpop.f32.mrf.mxu1 }
 0x103   : > { %v556_v16 = vsub.f32 %v316_v14, %v493_v15  ;;  %v797_v17 = vpop.f32.mrf.mxu0 }
 0x104   : > { %v853_v18 = vpop.f32.mrf.mxu1 }
 0x105   : > { %570 = vxpose.xlu0.b32.cont [3/16] (narrow) %v554_v10, 16  ;;  %v326_v20 = vpop.f32.mrf.mxu0  ;;  %v559_v25 = vsub.f32 %v797_v17, %v853_v18 }
 0x106   : > { %v503_v21 = vpop.f32.mrf.mxu1 }
 0x107   : > { %v558_v22 = vsub.f32 %v326_v20, %v503_v21  ;;  %v800_v23 = vpop.f32.mrf.mxu0 }
 0x108   : > { %v856_v24 = vpop.f32.mrf.mxu1 }
 0x109   : > { %571 = vxpose.xlu0.b32.cont [4/16] (narrow) %v555_v13, 16  ;;  %v336_v26 = vpop.f32.mrf.mxu0  ;;  %v561_v31 = vsub.f32 %v800_v23, %v856_v24 }
 0x10a   : > { %v513_v27 = vpop.f32.mrf.mxu1 }
 0x10b   : > { %v560_v28 = vsub.f32 %v336_v26, %v513_v27  ;;  %v803_v29 = vpop.f32.mrf.mxu0 }
 0x10c   : > { %v859_v30 = vpop.f32.mrf.mxu1 }
 0x10d   : > { %572 = vxpose.xlu0.b32.cont [5/16] (narrow) %v556_v16, 16  ;;  %v346_v32 = vpop.f32.mrf.mxu0  ;;  %v563_v37 = vsub.f32 %v803_v29, %v859_v30 }
 0x10e   : > { %v523_v33 = vpop.f32.mrf.mxu1 }
 0x10f   : > { %v562_v34 = vsub.f32 %v346_v32, %v523_v33  ;;  %v806_v35 = vpop.f32.mrf.mxu0 }
 0x110   : > { %v862_v36 = vpop.f32.mrf.mxu1 }
 0x111   : > { %573 = vxpose.xlu0.b32.cont [6/16] (narrow) %v557_v19, 16  ;;  %v356_v38 = vpop.f32.mrf.mxu0  ;;  %v565_v43 = vsub.f32 %v806_v35, %v862_v36 }
 0x112   : > { %v533_v39 = vpop.f32.mrf.mxu1 }
 0x113   : > { %v564_v40 = vsub.f32 %v356_v38, %v533_v39  ;;  %v809_v41 = vpop.f32.mrf.mxu0 }
 0x114   : > { %v865_v42 = vpop.f32.mrf.mxu1 }
 0x115   : > { %574 = vxpose.xlu0.b32.cont [7/16] (narrow) %v558_v22, 16  ;;  %v366_v44 = vpop.f32.mrf.mxu0  ;;  %v567_v47 = vsub.f32 %v809_v41, %v865_v42 }
 0x116   : > { %v543_v45 = vpop.f32.mrf.mxu1 }
 0x117   : > { %v566_v46 = vsub.f32 %v366_v44, %v543_v45 }
 0x119   : > { %575 = vxpose.xlu0.b32.cont [8/16] (narrow) %v559_v25, 16 }
 0x11d   : > { %576 = vxpose.xlu0.b32.cont [9/16] (narrow) %v560_v28, 16 }
 0x121   : > { %577 = vxpose.xlu0.b32.cont [10/16] (narrow) %v561_v31, 16 }
 0x125   : > { %578 = vxpose.xlu0.b32.cont [11/16] (narrow) %v562_v34, 16 }
 0x129   : > { %579 = vxpose.xlu0.b32.cont [12/16] (narrow) %v563_v37, 16 }
 0x12d   : > { %580 = vxpose.xlu0.b32.cont [13/16] (narrow) %v564_v40, 16 }
 0x131   : > { %581 = vxpose.xlu0.b32.cont [14/16] (narrow) %v565_v43, 16 }
 0x135   : > { %582 = vxpose.xlu0.b32.cont [15/16] (narrow) %v566_v46, 16 }
 0x139   : > { %583 = vxpose.xlu0.b32.end [16/16] (narrow) %v567_v47, 16 }
 0x179   : > { %v584_v48 = vpop.trf.xlu0 }
 0x17a   : > { %v600_v49 = vmul.f32 %v584_v48, %v584_v48 }
 0x17c   : > { %v601_v50 = vrot.slane %v600_v49, 4 }
 0x17d   : > { %v585_v54 = vpop.trf.xlu0 }
 0x17e   : > { %v602_v51 = vadd.f32 %v601_v50, %v600_v49  ;;  %v610_v58 = vadd.f32 %v609_v55, %v585_v54 }
 0x180   : > { %v603_v52 = vrot.slane %v602_v51, 2 }
 0x182   : > { %v604_v53 = vadd.f32 %v603_v52, %v602_v51 }
 0x184   : > { %v605_v56 = vrot.slane %v604_v53, 1 }
 0x186   : > { %v606_v57 = vadd.f32 %v605_v56, %v604_v53 }
 0x188   : > { %v607_v59 = vmul.f32 0.5, %v606_v57 }
 0x18a   : > { %v611_v60 = vadd.f32 %v610_v58, %v607_v59 }
 0x18c   : > { %612 = vst [vmem:[%s191_s24] sm:$0x1] %v611_v60 }
 0x18d   : > { %918 = shalt.err (!%p915_p3)
}
 0x18e   : > { %s919_s12 = scalar_lea.hbm %s624_s5, 16  ;;  %s923_s14 = scalar_lea.hbm %s1204_s4, 32 }
 0x18f   : > { %p920_p4 = scmp.ne.s32.totalorder %s624_s5, %s919_s12  ;;  %p924_p9 = scmp.lt.s32.totalorder %s624_s5, %s1204_s4 }
 0x190   : > { %p925_p10 = scmp.lt.s32.totalorder %s923_s14, %s919_s12 }
 0x191   : > { %p921_p7 = pnand %p920_p4, %p1033_p5 }
 0x192   : > { %p926_p11 = por %p925_p10, %p924_p9 }
 0x193   : > { %p922_p8 = pneg %p921_p7 }
 0x195   : > { %p927_p12 = pnand %p926_p11, %p922_p8 }
 0x197   : > { %930 = shalt.err (!%p927_p12)
}
 0x198   : > { %866 = dma.vmem_to_hbm [thread:$0]  (%p1033_p5), %s627_s28, 16, %s624_s5, %s614_s6  }
 0x199 PF: > { %p872_p13 = scmp.ge.s32.totalorder %s965_s20, 2  ;;  %s638_s16 = sand.u32 1, %s953_s17  }
 0x19a   : > { %s639_s21 = scalar_lea.sflag [#allocation4], %s638_s16 }
 0x19b   : > { %p869_p0 = pnand %p872_p13, %p1037_p6 }
 0x19d   : > { %p870_p1 = pneg %p869_p0 }
 0x19f   : > { %948 = dma.done.wait (%p870_p1), %s639_s21, 16  }
 0x1a0   : > { %950 = vsyncadd (%p870_p1), %s639_s21, 4294967280  ;;  %p15_p2 = scmp.ge.s32.totalorder %s1019_s22, 4   ;;  %s1207_s17 = smov %s957_s18 }
 0x1a1   : > { %s1208_s18 = smov %s961_s19  ;;  %s1209_s19 = smov %s1031_s25 }
 0x1a2   : > { %s1210_s20 = smov %s1019_s22  ;;  %17 = sbr.rel (!%p15_p2) target bundleno = 5 (0x5), region = 71 }
 0x1a7   :  { %643 = vsyncpa [#allocation4], 1 }
 0x1a8   :  { %645 = vsyncpa [#allocation4 + $0x1], 1 }

</bundles_post_ra>
